<compile_context>
chip_gen: v7x
topology: tpu7x:2x2x1
jax: 0.10.0
libtpu: 0.0.40
codegen_flags: <defaults>
</compile_context>

<pallas_src>
import jax
import jax.numpy as jnp
from jax.experimental import pallas as pl
from jax.experimental.pallas import tpu as pltpu


def _round_up(x, m):
    return (x + m - 1) // m * m


def lstm_classifier_kernel(x_ref, w_cat_ref, b_ref, w_out_ref, b_out_ref, out_ref):
    """Single invocation: full LSTM recurrence + classifier head.

    x_ref     : (T, Bp, E)   bf16   whole (padded-batch) embedded sequence
    w_cat_ref : (E+H, 4H)    bf16   [W_ih^T ; W_hh^T] fused gate weights
    b_ref     : (1, 4H)      f32    b_ih + b_hh
    w_out_ref : (H, Lp)      bf16   hidden2label weights, label dim padded to 128
    b_out_ref : (1, Lp)      f32    bias, padded label columns = -1e30
    out_ref   : (Bp, Lp)     f32    log-probabilities (lane-dense store)
    """
    T, B, _ = x_ref.shape
    H = w_out_ref.shape[0]

    # Hoist loop-invariant loads / broadcasts (JAX does not CSE broadcast_in_dim).
    w_cat = w_cat_ref[...]                                      # (E+H, 4H)
    bias = jnp.broadcast_to(b_ref[...], (B, 4 * H))             # (B, 4H) f32
    w_out = w_out_ref[...]                                      # (H, Lp)
    b_out = b_out_ref[...]                                      # (1, Lp)

    h0 = jnp.zeros((B, H), jnp.float32)
    c0 = jnp.zeros((B, H), jnp.float32)

    def step(t, carry):
        h, c = carry
        x_t = x_ref[t]                                          # (B, E) bf16
        xh = jnp.concatenate([x_t, h.astype(x_t.dtype)], axis=-1)   # (B, E+H)
        # One fused MXU matmul for all four gates; PyTorch order [i, f, g, o].
        gates = jnp.dot(xh, w_cat, preferred_element_type=jnp.float32) + bias
        i_g = jax.nn.sigmoid(gates[:, 0 * H:1 * H])
        f_g = jax.nn.sigmoid(gates[:, 1 * H:2 * H])
        g_g = jnp.tanh(gates[:, 2 * H:3 * H])
        o_g = jax.nn.sigmoid(gates[:, 3 * H:4 * H])
        c_new = f_g * c + i_g * g_g
        h_new = o_g * jnp.tanh(c_new)
        return h_new, c_new

    # Short sequences: fully unroll so the LLO scheduler sees the whole chain.
    h_last, _ = jax.lax.fori_loop(0, T, step, (h0, c0), unroll=(T <= 16))

    # hidden2label on lstm_out[-1], then log_softmax over the real label columns;
    # padded columns carry a -1e30 bias so exp() of them is 0 and they do not
    # perturb max / logsumexp.  Output store is a full (Bp, 128) lane-dense slab.
    logits = (jnp.dot(h_last.astype(w_out.dtype), w_out,
                      preferred_element_type=jnp.float32) + b_out)   # (B, Lp)
    m = jnp.max(logits, axis=1, keepdims=True)
    shifted = logits - m
    lse = jnp.log(jnp.sum(jnp.exp(shifted), axis=1, keepdims=True))
    out_ref[...] = shifted - lse


def lstm_classifier_forward(sentence, params, *, matmul_dtype=jnp.bfloat16):
    """sentence: (seq_len, batch) int32 token ids -> (batch, label_size) log-probs."""
    emb = params["embedding"]          # (V, E)
    w_ih = params["w_ih"]              # (4H, E)
    w_hh = params["w_hh"]              # (4H, H)
    b_ih = params["b_ih"]              # (4H,)
    b_hh = params["b_hh"]              # (4H,)
    w_out = params["w_out"]            # (L, H)
    b_out = params["b_out"]            # (L,)

    seq_len, batch = sentence.shape
    E = emb.shape[1]
    H = w_hh.shape[1]
    L = w_out.shape[0]

    B_pad = max(8, _round_up(batch, 8))      # fill vreg sublanes
    L_pad = max(128, _round_up(L, 128))      # lane-dense output store

    # Embedding lookup (gather) stays in plain JAX glue.
    # TODO(synk): fuse the gather into the kernel via scalar-prefetched token ids
    # (pl.Element row gather) once E/seq_len grow enough to matter.
    x = jnp.take(emb, sentence, axis=0).reshape(seq_len, batch, E)
    x = jnp.pad(x, ((0, 0), (0, B_pad - batch), (0, 0))).astype(matmul_dtype)

    # Fused gate weights: a single (B, E+H) @ (E+H, 4H) matmul per timestep.
    w_cat = jnp.concatenate([w_ih.T, w_hh.T], axis=0).astype(matmul_dtype)  # (E+H, 4H)
    b_comb = (b_ih + b_hh).reshape(1, 4 * H).astype(jnp.float32)

    # Classifier head padded to 128 lanes; padded bias columns = -1e30.
    w_out_t = jnp.zeros((H, L_pad), matmul_dtype).at[:, :L].set(
        w_out.T.astype(matmul_dtype))
    b_out_p = jnp.full((1, L_pad), -1e30, jnp.float32).at[0, :L].set(
        b_out.astype(jnp.float32))

    # Whole sequence resident in VMEM (seq_len * B_pad * E * 2B is tiny here).
    # For very long sequences, chunk the time axis across an "arbitrary" grid
    # dimension while keeping h/c as persistent scratch.
    out = pl.pallas_call(
        lstm_classifier_kernel,
        out_shape=jax.ShapeDtypeStruct((B_pad, L_pad), jnp.float32),
        grid=(1,),
        in_specs=[
            pl.BlockSpec((seq_len, B_pad, E), lambda i: (0, 0, 0)),  # x (full seq)
            pl.BlockSpec((E + H, 4 * H), lambda i: (0, 0)),          # W_cat
            pl.BlockSpec((1, 4 * H), lambda i: (0, 0)),              # gate bias
            pl.BlockSpec((H, L_pad), lambda i: (0, 0)),              # W_out^T (padded)
            pl.BlockSpec((1, L_pad), lambda i: (0, 0)),              # b_out (padded)
        ],
        out_specs=pl.BlockSpec((B_pad, L_pad), lambda i: (0, 0)),
        compiler_params=pltpu.CompilerParams(
            dimension_semantics=("arbitrary",)),                     # serial recurrence
    )(x, w_cat, b_comb, w_out_t, b_out_p)

    return out[:batch, :L]


def init_params(key, vocab_size, embedding_dim, hidden_dim, label_size):
    ks = jax.random.split(key, 7)
    s = 1.0 / jnp.sqrt(hidden_dim)
    return {
        "embedding": jax.random.normal(ks[0], (vocab_size, embedding_dim),
                                       jnp.float32),
        "w_ih": jax.random.uniform(ks[1], (4 * hidden_dim, embedding_dim),
                                   jnp.float32, -s, s),
        "w_hh": jax.random.uniform(ks[2], (4 * hidden_dim, hidden_dim),
                                   jnp.float32, -s, s),
        "b_ih": jax.random.uniform(ks[3], (4 * hidden_dim,),
                                   jnp.float32, -s, s),
        "b_hh": jax.random.uniform(ks[4], (4 * hidden_dim,),
                                   jnp.float32, -s, s),
        "w_out": jax.random.uniform(ks[5], (label_size, hidden_dim),
                                    jnp.float32, -s, s),
        "b_out": jax.random.uniform(ks[6], (label_size,),
                                    jnp.float32, -s, s),
    }


if __name__ == "__main__":
    embedding_dim = 16
    hidden_dim = 32
    vocab_size = 50
    label_size = 3
    batch_size = 2
    seq_len = 8

    key = jax.random.PRNGKey(0)
    pkey, skey = jax.random.split(key)
    params = init_params(pkey, vocab_size, embedding_dim, hidden_dim, label_size)

    sentence = jax.random.randint(skey, (seq_len, batch_size), 0, vocab_size,
                                  dtype=jnp.int32)

    log_probs = lstm_classifier_forward(sentence, params)
    jax.block_until_ready(log_probs)

    assert log_probs.shape == (batch_size, label_size)
    # sanity: rows of log_softmax sum to 1 in prob space
    assert jnp.allclose(jnp.sum(jnp.exp(log_probs), axis=1), 1.0, atol=1e-3)
    print("KERNEL_OK")
</pallas_src>

<mosaic_0001>
module attributes {stable_mosaic.version = 11 : i64} {
  func.func @lstm_classifier_kernel(%arg0: i32, %arg1: memref<8x8x16xbf16, #tpu.memory_space<vmem>>, %arg2: memref<48x128xbf16, #tpu.memory_space<vmem>>, %arg3: memref<1x128xf32, #tpu.memory_space<vmem>>, %arg4: memref<32x128xbf16, #tpu.memory_space<vmem>>, %arg5: memref<1x128xf32, #tpu.memory_space<vmem>>, %arg6: memref<8x128xf32, #tpu.memory_space<vmem>>) attributes {dimension_semantics = [#tpu.dimension_semantics<arbitrary>], iteration_bounds = array<i64: 1>, scalar_prefetch = 0 : i64, scratch_operands = 0 : i64, tpu.core_type = #tpu.core_type<tc>, window_params = [{pipeline_mode = #tpu.pipeline_mode<synchronous>, transform_indices = @transform_0, window_bounds = array<i64: 8, 8, 16>}, {pipeline_mode = #tpu.pipeline_mode<synchronous>, transform_indices = @transform_1, window_bounds = array<i64: 48, 128>}, {pipeline_mode = #tpu.pipeline_mode<synchronous>, transform_indices = @transform_2, window_bounds = array<i64: 1, 128>}, {pipeline_mode = #tpu.pipeline_mode<synchronous>, transform_indices = @transform_3, window_bounds = array<i64: 32, 128>}, {pipeline_mode = #tpu.pipeline_mode<synchronous>, transform_indices = @transform_4, window_bounds = array<i64: 1, 128>}, {pipeline_mode = #tpu.pipeline_mode<synchronous>, transform_indices = @transform_5, window_bounds = array<i64: 8, 128>}]} {
    %c0 = arith.constant 0 : index
    %c0_0 = arith.constant 0 : index
    %0 = vector.load %arg2[%c0, %c0_0] : memref<48x128xbf16, #tpu.memory_space<vmem>>, vector<48x128xbf16>
    %c0_1 = arith.constant 0 : index
    %c0_2 = arith.constant 0 : index
    %1 = vector.load %arg3[%c0_1, %c0_2] : memref<1x128xf32, #tpu.memory_space<vmem>>, vector<1x128xf32>
    %2 = vector.shape_cast %1 : vector<1x128xf32> to vector<1x128xf32>
    %3 = vector.broadcast %2 : vector<1x128xf32> to vector<8x128xf32>
    %c0_3 = arith.constant 0 : index
    %c0_4 = arith.constant 0 : index
    %4 = vector.load %arg4[%c0_3, %c0_4] : memref<32x128xbf16, #tpu.memory_space<vmem>>, vector<32x128xbf16>
    %c0_5 = arith.constant 0 : index
    %c0_6 = arith.constant 0 : index
    %5 = vector.load %arg5[%c0_5, %c0_6] : memref<1x128xf32, #tpu.memory_space<vmem>>, vector<1x128xf32>
    %cst = arith.constant 0.000000e+00 : f32
    %6 = vector.broadcast %cst : f32 to vector<8x32xf32>
    %cst_7 = arith.constant 0.000000e+00 : f32
    %7 = vector.broadcast %cst_7 : f32 to vector<8x32xf32>
    %c0_i32 = arith.constant 0 : i32
    %8 = arith.index_cast %c0_i32 : i32 to index
    %c0_8 = arith.constant 0 : index
    %c0_9 = arith.constant 0 : index
    %9 = vector.load %arg1[%8, %c0_8, %c0_9] : memref<8x8x16xbf16, #tpu.memory_space<vmem>>, vector<1x8x16xbf16>
    %10 = vector.shape_cast %9 : vector<1x8x16xbf16> to vector<8x16xbf16>
    %11 = arith.truncf %6 : vector<8x32xf32> to vector<8x32xbf16>
    %12 = tpu.concatenate %10, %11 in 1 : vector<8x16xbf16>, vector<8x32xbf16> -> vector<8x48xbf16>
    %cst_10 = arith.constant dense<0.000000e+00> : vector<8x128xf32>
    %13 = tpu.matmul %12, %0, %cst_10 {dimension_numbers = #tpu.dot_dimension_numbers<[1], [0], [0], [1], [0, 0, 1, 1], [], []>} : vector<8x48xbf16>, vector<48x128xbf16>, vector<8x128xf32> -> vector<8x128xf32>
    %14 = arith.addf %13, %3 : vector<8x128xf32>
    %15 = vector.extract_strided_slice %14 {offsets = [0, 0], sizes = [8, 32], strides = [1, 1]} : vector<8x128xf32> to vector<8x32xf32>
    %16 = arith.negf %15 : vector<8x32xf32>
    %17 = math.exp %16 : vector<8x32xf32>
    %cst_11 = arith.constant 1.000000e+00 : f32
    %18 = vector.broadcast %cst_11 : f32 to vector<8x32xf32>
    %19 = arith.addf %18, %17 : vector<8x32xf32>
    %20 = arith.divf %18, %19 : vector<8x32xf32>
    %21 = vector.extract_strided_slice %14 {offsets = [0, 32], sizes = [8, 32], strides = [1, 1]} : vector<8x128xf32> to vector<8x32xf32>
    %22 = arith.negf %21 : vector<8x32xf32>
    %23 = math.exp %22 : vector<8x32xf32>
    %cst_12 = arith.constant 1.000000e+00 : f32
    %24 = vector.broadcast %cst_12 : f32 to vector<8x32xf32>
    %25 = arith.addf %24, %23 : vector<8x32xf32>
    %26 = arith.divf %24, %25 : vector<8x32xf32>
    %27 = vector.extract_strided_slice %14 {offsets = [0, 64], sizes = [8, 32], strides = [1, 1]} : vector<8x128xf32> to vector<8x32xf32>
    %28 = math.tanh %27 : vector<8x32xf32>
    %29 = vector.extract_strided_slice %14 {offsets = [0, 96], sizes = [8, 32], strides = [1, 1]} : vector<8x128xf32> to vector<8x32xf32>
    %30 = arith.negf %29 : vector<8x32xf32>
    %31 = math.exp %30 : vector<8x32xf32>
    %cst_13 = arith.constant 1.000000e+00 : f32
    %32 = vector.broadcast %cst_13 : f32 to vector<8x32xf32>
    %33 = arith.addf %32, %31 : vector<8x32xf32>
    %34 = arith.divf %32, %33 : vector<8x32xf32>
    %35 = arith.mulf %26, %7 : vector<8x32xf32>
    %36 = arith.mulf %20, %28 : vector<8x32xf32>
    %37 = arith.addf %35, %36 : vector<8x32xf32>
    %38 = math.tanh %37 : vector<8x32xf32>
    %39 = arith.mulf %34, %38 : vector<8x32xf32>
    %c1_i32 = arith.constant 1 : i32
    %40 = arith.index_cast %c1_i32 : i32 to index
    %c0_14 = arith.constant 0 : index
    %c0_15 = arith.constant 0 : index
    %41 = vector.load %arg1[%40, %c0_14, %c0_15] : memref<8x8x16xbf16, #tpu.memory_space<vmem>>, vector<1x8x16xbf16>
    %42 = vector.shape_cast %41 : vector<1x8x16xbf16> to vector<8x16xbf16>
    %43 = arith.truncf %39 : vector<8x32xf32> to vector<8x32xbf16>
    %44 = tpu.concatenate %42, %43 in 1 : vector<8x16xbf16>, vector<8x32xbf16> -> vector<8x48xbf16>
    %cst_16 = arith.constant dense<0.000000e+00> : vector<8x128xf32>
    %45 = tpu.matmul %44, %0, %cst_16 {dimension_numbers = #tpu.dot_dimension_numbers<[1], [0], [0], [1], [0, 0, 1, 1], [], []>} : vector<8x48xbf16>, vector<48x128xbf16>, vector<8x128xf32> -> vector<8x128xf32>
    %46 = arith.addf %45, %3 : vector<8x128xf32>
    %47 = vector.extract_strided_slice %46 {offsets = [0, 0], sizes = [8, 32], strides = [1, 1]} : vector<8x128xf32> to vector<8x32xf32>
    %48 = arith.negf %47 : vector<8x32xf32>
    %49 = math.exp %48 : vector<8x32xf32>
    %cst_17 = arith.constant 1.000000e+00 : f32
    %50 = vector.broadcast %cst_17 : f32 to vector<8x32xf32>
    %51 = arith.addf %50, %49 : vector<8x32xf32>
    %52 = arith.divf %50, %51 : vector<8x32xf32>
    %53 = vector.extract_strided_slice %46 {offsets = [0, 32], sizes = [8, 32], strides = [1, 1]} : vector<8x128xf32> to vector<8x32xf32>
    %54 = arith.negf %53 : vector<8x32xf32>
    %55 = math.exp %54 : vector<8x32xf32>
    %cst_18 = arith.constant 1.000000e+00 : f32
    %56 = vector.broadcast %cst_18 : f32 to vector<8x32xf32>
    %57 = arith.addf %56, %55 : vector<8x32xf32>
    %58 = arith.divf %56, %57 : vector<8x32xf32>
    %59 = vector.extract_strided_slice %46 {offsets = [0, 64], sizes = [8, 32], strides = [1, 1]} : vector<8x128xf32> to vector<8x32xf32>
    %60 = math.tanh %59 : vector<8x32xf32>
    %61 = vector.extract_strided_slice %46 {offsets = [0, 96], sizes = [8, 32], strides = [1, 1]} : vector<8x128xf32> to vector<8x32xf32>
    %62 = arith.negf %61 : vector<8x32xf32>
    %63 = math.exp %62 : vector<8x32xf32>
    %cst_19 = arith.constant 1.000000e+00 : f32
    %64 = vector.broadcast %cst_19 : f32 to vector<8x32xf32>
    %65 = arith.addf %64, %63 : vector<8x32xf32>
    %66 = arith.divf %64, %65 : vector<8x32xf32>
    %67 = arith.mulf %58, %37 : vector<8x32xf32>
    %68 = arith.mulf %52, %60 : vector<8x32xf32>
    %69 = arith.addf %67, %68 : vector<8x32xf32>
    %70 = math.tanh %69 : vector<8x32xf32>
    %71 = arith.mulf %66, %70 : vector<8x32xf32>
    %c2_i32 = arith.constant 2 : i32
    %72 = arith.index_cast %c2_i32 : i32 to index
    %c0_20 = arith.constant 0 : index
    %c0_21 = arith.constant 0 : index
    %73 = vector.load %arg1[%72, %c0_20, %c0_21] : memref<8x8x16xbf16, #tpu.memory_space<vmem>>, vector<1x8x16xbf16>
    %74 = vector.shape_cast %73 : vector<1x8x16xbf16> to vector<8x16xbf16>
    %75 = arith.truncf %71 : vector<8x32xf32> to vector<8x32xbf16>
    %76 = tpu.concatenate %74, %75 in 1 : vector<8x16xbf16>, vector<8x32xbf16> -> vector<8x48xbf16>
    %cst_22 = arith.constant dense<0.000000e+00> : vector<8x128xf32>
    %77 = tpu.matmul %76, %0, %cst_22 {dimension_numbers = #tpu.dot_dimension_numbers<[1], [0], [0], [1], [0, 0, 1, 1], [], []>} : vector<8x48xbf16>, vector<48x128xbf16>, vector<8x128xf32> -> vector<8x128xf32>
    %78 = arith.addf %77, %3 : vector<8x128xf32>
    %79 = vector.extract_strided_slice %78 {offsets = [0, 0], sizes = [8, 32], strides = [1, 1]} : vector<8x128xf32> to vector<8x32xf32>
    %80 = arith.negf %79 : vector<8x32xf32>
    %81 = math.exp %80 : vector<8x32xf32>
    %cst_23 = arith.constant 1.000000e+00 : f32
    %82 = vector.broadcast %cst_23 : f32 to vector<8x32xf32>
    %83 = arith.addf %82, %81 : vector<8x32xf32>
    %84 = arith.divf %82, %83 : vector<8x32xf32>
    %85 = vector.extract_strided_slice %78 {offsets = [0, 32], sizes = [8, 32], strides = [1, 1]} : vector<8x128xf32> to vector<8x32xf32>
    %86 = arith.negf %85 : vector<8x32xf32>
    %87 = math.exp %86 : vector<8x32xf32>
    %cst_24 = arith.constant 1.000000e+00 : f32
    %88 = vector.broadcast %cst_24 : f32 to vector<8x32xf32>
    %89 = arith.addf %88, %87 : vector<8x32xf32>
    %90 = arith.divf %88, %89 : vector<8x32xf32>
    %91 = vector.extract_strided_slice %78 {offsets = [0, 64], sizes = [8, 32], strides = [1, 1]} : vector<8x128xf32> to vector<8x32xf32>
    %92 = math.tanh %91 : vector<8x32xf32>
    %93 = vector.extract_strided_slice %78 {offsets = [0, 96], sizes = [8, 32], strides = [1, 1]} : vector<8x128xf32> to vector<8x32xf32>
    %94 = arith.negf %93 : vector<8x32xf32>
    %95 = math.exp %94 : vector<8x32xf32>
    %cst_25 = arith.constant 1.000000e+00 : f32
    %96 = vector.broadcast %cst_25 : f32 to vector<8x32xf32>
    %97 = arith.addf %96, %95 : vector<8x32xf32>
    %98 = arith.divf %96, %97 : vector<8x32xf32>
    %99 = arith.mulf %90, %69 : vector<8x32xf32>
    %100 = arith.mulf %84, %92 : vector<8x32xf32>
    %101 = arith.addf %99, %100 : vector<8x32xf32>
    %102 = math.tanh %101 : vector<8x32xf32>
    %103 = arith.mulf %98, %102 : vector<8x32xf32>
    %c3_i32 = arith.constant 3 : i32
    %104 = arith.index_cast %c3_i32 : i32 to index
    %c0_26 = arith.constant 0 : index
    %c0_27 = arith.constant 0 : index
    %105 = vector.load %arg1[%104, %c0_26, %c0_27] : memref<8x8x16xbf16, #tpu.memory_space<vmem>>, vector<1x8x16xbf16>
    %106 = vector.shape_cast %105 : vector<1x8x16xbf16> to vector<8x16xbf16>
    %107 = arith.truncf %103 : vector<8x32xf32> to vector<8x32xbf16>
    %108 = tpu.concatenate %106, %107 in 1 : vector<8x16xbf16>, vector<8x32xbf16> -> vector<8x48xbf16>
    %cst_28 = arith.constant dense<0.000000e+00> : vector<8x128xf32>
    %109 = tpu.matmul %108, %0, %cst_28 {dimension_numbers = #tpu.dot_dimension_numbers<[1], [0], [0], [1], [0, 0, 1, 1], [], []>} : vector<8x48xbf16>, vector<48x128xbf16>, vector<8x128xf32> -> vector<8x128xf32>
    %110 = arith.addf %109, %3 : vector<8x128xf32>
    %111 = vector.extract_strided_slice %110 {offsets = [0, 0], sizes = [8, 32], strides = [1, 1]} : vector<8x128xf32> to vector<8x32xf32>
    %112 = arith.negf %111 : vector<8x32xf32>
    %113 = math.exp %112 : vector<8x32xf32>
    %cst_29 = arith.constant 1.000000e+00 : f32
    %114 = vector.broadcast %cst_29 : f32 to vector<8x32xf32>
    %115 = arith.addf %114, %113 : vector<8x32xf32>
    %116 = arith.divf %114, %115 : vector<8x32xf32>
    %117 = vector.extract_strided_slice %110 {offsets = [0, 32], sizes = [8, 32], strides = [1, 1]} : vector<8x128xf32> to vector<8x32xf32>
    %118 = arith.negf %117 : vector<8x32xf32>
    %119 = math.exp %118 : vector<8x32xf32>
    %cst_30 = arith.constant 1.000000e+00 : f32
    %120 = vector.broadcast %cst_30 : f32 to vector<8x32xf32>
    %121 = arith.addf %120, %119 : vector<8x32xf32>
    %122 = arith.divf %120, %121 : vector<8x32xf32>
    %123 = vector.extract_strided_slice %110 {offsets = [0, 64], sizes = [8, 32], strides = [1, 1]} : vector<8x128xf32> to vector<8x32xf32>
    %124 = math.tanh %123 : vector<8x32xf32>
    %125 = vector.extract_strided_slice %110 {offsets = [0, 96], sizes = [8, 32], strides = [1, 1]} : vector<8x128xf32> to vector<8x32xf32>
    %126 = arith.negf %125 : vector<8x32xf32>
    %127 = math.exp %126 : vector<8x32xf32>
    %cst_31 = arith.constant 1.000000e+00 : f32
    %128 = vector.broadcast %cst_31 : f32 to vector<8x32xf32>
    %129 = arith.addf %128, %127 : vector<8x32xf32>
    %130 = arith.divf %128, %129 : vector<8x32xf32>
    %131 = arith.mulf %122, %101 : vector<8x32xf32>
    %132 = arith.mulf %116, %124 : vector<8x32xf32>
    %133 = arith.addf %131, %132 : vector<8x32xf32>
    %134 = math.tanh %133 : vector<8x32xf32>
    %135 = arith.mulf %130, %134 : vector<8x32xf32>
    %c4_i32 = arith.constant 4 : i32
    %136 = arith.index_cast %c4_i32 : i32 to index
    %c0_32 = arith.constant 0 : index
    %c0_33 = arith.constant 0 : index
    %137 = vector.load %arg1[%136, %c0_32, %c0_33] : memref<8x8x16xbf16, #tpu.memory_space<vmem>>, vector<1x8x16xbf16>
    %138 = vector.shape_cast %137 : vector<1x8x16xbf16> to vector<8x16xbf16>
    %139 = arith.truncf %135 : vector<8x32xf32> to vector<8x32xbf16>
    %140 = tpu.concatenate %138, %139 in 1 : vector<8x16xbf16>, vector<8x32xbf16> -> vector<8x48xbf16>
    %cst_34 = arith.constant dense<0.000000e+00> : vector<8x128xf32>
    %141 = tpu.matmul %140, %0, %cst_34 {dimension_numbers = #tpu.dot_dimension_numbers<[1], [0], [0], [1], [0, 0, 1, 1], [], []>} : vector<8x48xbf16>, vector<48x128xbf16>, vector<8x128xf32> -> vector<8x128xf32>
    %142 = arith.addf %141, %3 : vector<8x128xf32>
    %143 = vector.extract_strided_slice %142 {offsets = [0, 0], sizes = [8, 32], strides = [1, 1]} : vector<8x128xf32> to vector<8x32xf32>
    %144 = arith.negf %143 : vector<8x32xf32>
    %145 = math.exp %144 : vector<8x32xf32>
    %cst_35 = arith.constant 1.000000e+00 : f32
    %146 = vector.broadcast %cst_35 : f32 to vector<8x32xf32>
    %147 = arith.addf %146, %145 : vector<8x32xf32>
    %148 = arith.divf %146, %147 : vector<8x32xf32>
    %149 = vector.extract_strided_slice %142 {offsets = [0, 32], sizes = [8, 32], strides = [1, 1]} : vector<8x128xf32> to vector<8x32xf32>
    %150 = arith.negf %149 : vector<8x32xf32>
    %151 = math.exp %150 : vector<8x32xf32>
    %cst_36 = arith.constant 1.000000e+00 : f32
    %152 = vector.broadcast %cst_36 : f32 to vector<8x32xf32>
    %153 = arith.addf %152, %151 : vector<8x32xf32>
    %154 = arith.divf %152, %153 : vector<8x32xf32>
    %155 = vector.extract_strided_slice %142 {offsets = [0, 64], sizes = [8, 32], strides = [1, 1]} : vector<8x128xf32> to vector<8x32xf32>
    %156 = math.tanh %155 : vector<8x32xf32>
    %157 = vector.extract_strided_slice %142 {offsets = [0, 96], sizes = [8, 32], strides = [1, 1]} : vector<8x128xf32> to vector<8x32xf32>
    %158 = arith.negf %157 : vector<8x32xf32>
    %159 = math.exp %158 : vector<8x32xf32>
    %cst_37 = arith.constant 1.000000e+00 : f32
    %160 = vector.broadcast %cst_37 : f32 to vector<8x32xf32>
    %161 = arith.addf %160, %159 : vector<8x32xf32>
    %162 = arith.divf %160, %161 : vector<8x32xf32>
    %163 = arith.mulf %154, %133 : vector<8x32xf32>
    %164 = arith.mulf %148, %156 : vector<8x32xf32>
    %165 = arith.addf %163, %164 : vector<8x32xf32>
    %166 = math.tanh %165 : vector<8x32xf32>
    %167 = arith.mulf %162, %166 : vector<8x32xf32>
    %c5_i32 = arith.constant 5 : i32
    %168 = arith.index_cast %c5_i32 : i32 to index
    %c0_38 = arith.constant 0 : index
    %c0_39 = arith.constant 0 : index
    %169 = vector.load %arg1[%168, %c0_38, %c0_39] : memref<8x8x16xbf16, #tpu.memory_space<vmem>>, vector<1x8x16xbf16>
    %170 = vector.shape_cast %169 : vector<1x8x16xbf16> to vector<8x16xbf16>
    %171 = arith.truncf %167 : vector<8x32xf32> to vector<8x32xbf16>
    %172 = tpu.concatenate %170, %171 in 1 : vector<8x16xbf16>, vector<8x32xbf16> -> vector<8x48xbf16>
    %cst_40 = arith.constant dense<0.000000e+00> : vector<8x128xf32>
    %173 = tpu.matmul %172, %0, %cst_40 {dimension_numbers = #tpu.dot_dimension_numbers<[1], [0], [0], [1], [0, 0, 1, 1], [], []>} : vector<8x48xbf16>, vector<48x128xbf16>, vector<8x128xf32> -> vector<8x128xf32>
    %174 = arith.addf %173, %3 : vector<8x128xf32>
    %175 = vector.extract_strided_slice %174 {offsets = [0, 0], sizes = [8, 32], strides = [1, 1]} : vector<8x128xf32> to vector<8x32xf32>
    %176 = arith.negf %175 : vector<8x32xf32>
    %177 = math.exp %176 : vector<8x32xf32>
    %cst_41 = arith.constant 1.000000e+00 : f32
    %178 = vector.broadcast %cst_41 : f32 to vector<8x32xf32>
    %179 = arith.addf %178, %177 : vector<8x32xf32>
    %180 = arith.divf %178, %179 : vector<8x32xf32>
    %181 = vector.extract_strided_slice %174 {offsets = [0, 32], sizes = [8, 32], strides = [1, 1]} : vector<8x128xf32> to vector<8x32xf32>
    %182 = arith.negf %181 : vector<8x32xf32>
    %183 = math.exp %182 : vector<8x32xf32>
    %cst_42 = arith.constant 1.000000e+00 : f32
    %184 = vector.broadcast %cst_42 : f32 to vector<8x32xf32>
    %185 = arith.addf %184, %183 : vector<8x32xf32>
    %186 = arith.divf %184, %185 : vector<8x32xf32>
    %187 = vector.extract_strided_slice %174 {offsets = [0, 64], sizes = [8, 32], strides = [1, 1]} : vector<8x128xf32> to vector<8x32xf32>
    %188 = math.tanh %187 : vector<8x32xf32>
    %189 = vector.extract_strided_slice %174 {offsets = [0, 96], sizes = [8, 32], strides = [1, 1]} : vector<8x128xf32> to vector<8x32xf32>
    %190 = arith.negf %189 : vector<8x32xf32>
    %191 = math.exp %190 : vector<8x32xf32>
    %cst_43 = arith.constant 1.000000e+00 : f32
    %192 = vector.broadcast %cst_43 : f32 to vector<8x32xf32>
    %193 = arith.addf %192, %191 : vector<8x32xf32>
    %194 = arith.divf %192, %193 : vector<8x32xf32>
    %195 = arith.mulf %186, %165 : vector<8x32xf32>
    %196 = arith.mulf %180, %188 : vector<8x32xf32>
    %197 = arith.addf %195, %196 : vector<8x32xf32>
    %198 = math.tanh %197 : vector<8x32xf32>
    %199 = arith.mulf %194, %198 : vector<8x32xf32>
    %c6_i32 = arith.constant 6 : i32
    %200 = arith.index_cast %c6_i32 : i32 to index
    %c0_44 = arith.constant 0 : index
    %c0_45 = arith.constant 0 : index
    %201 = vector.load %arg1[%200, %c0_44, %c0_45] : memref<8x8x16xbf16, #tpu.memory_space<vmem>>, vector<1x8x16xbf16>
    %202 = vector.shape_cast %201 : vector<1x8x16xbf16> to vector<8x16xbf16>
    %203 = arith.truncf %199 : vector<8x32xf32> to vector<8x32xbf16>
    %204 = tpu.concatenate %202, %203 in 1 : vector<8x16xbf16>, vector<8x32xbf16> -> vector<8x48xbf16>
    %cst_46 = arith.constant dense<0.000000e+00> : vector<8x128xf32>
    %205 = tpu.matmul %204, %0, %cst_46 {dimension_numbers = #tpu.dot_dimension_numbers<[1], [0], [0], [1], [0, 0, 1, 1], [], []>} : vector<8x48xbf16>, vector<48x128xbf16>, vector<8x128xf32> -> vector<8x128xf32>
    %206 = arith.addf %205, %3 : vector<8x128xf32>
    %207 = vector.extract_strided_slice %206 {offsets = [0, 0], sizes = [8, 32], strides = [1, 1]} : vector<8x128xf32> to vector<8x32xf32>
    %208 = arith.negf %207 : vector<8x32xf32>
    %209 = math.exp %208 : vector<8x32xf32>
    %cst_47 = arith.constant 1.000000e+00 : f32
    %210 = vector.broadcast %cst_47 : f32 to vector<8x32xf32>
    %211 = arith.addf %210, %209 : vector<8x32xf32>
    %212 = arith.divf %210, %211 : vector<8x32xf32>
    %213 = vector.extract_strided_slice %206 {offsets = [0, 32], sizes = [8, 32], strides = [1, 1]} : vector<8x128xf32> to vector<8x32xf32>
    %214 = arith.negf %213 : vector<8x32xf32>
    %215 = math.exp %214 : vector<8x32xf32>
    %cst_48 = arith.constant 1.000000e+00 : f32
    %216 = vector.broadcast %cst_48 : f32 to vector<8x32xf32>
    %217 = arith.addf %216, %215 : vector<8x32xf32>
    %218 = arith.divf %216, %217 : vector<8x32xf32>
    %219 = vector.extract_strided_slice %206 {offsets = [0, 64], sizes = [8, 32], strides = [1, 1]} : vector<8x128xf32> to vector<8x32xf32>
    %220 = math.tanh %219 : vector<8x32xf32>
    %221 = vector.extract_strided_slice %206 {offsets = [0, 96], sizes = [8, 32], strides = [1, 1]} : vector<8x128xf32> to vector<8x32xf32>
    %222 = arith.negf %221 : vector<8x32xf32>
    %223 = math.exp %222 : vector<8x32xf32>
    %cst_49 = arith.constant 1.000000e+00 : f32
    %224 = vector.broadcast %cst_49 : f32 to vector<8x32xf32>
    %225 = arith.addf %224, %223 : vector<8x32xf32>
    %226 = arith.divf %224, %225 : vector<8x32xf32>
    %227 = arith.mulf %218, %197 : vector<8x32xf32>
    %228 = arith.mulf %212, %220 : vector<8x32xf32>
    %229 = arith.addf %227, %228 : vector<8x32xf32>
    %230 = math.tanh %229 : vector<8x32xf32>
    %231 = arith.mulf %226, %230 : vector<8x32xf32>
    %c7_i32 = arith.constant 7 : i32
    %232 = arith.index_cast %c7_i32 : i32 to index
    %c0_50 = arith.constant 0 : index
    %c0_51 = arith.constant 0 : index
    %233 = vector.load %arg1[%232, %c0_50, %c0_51] : memref<8x8x16xbf16, #tpu.memory_space<vmem>>, vector<1x8x16xbf16>
    %234 = vector.shape_cast %233 : vector<1x8x16xbf16> to vector<8x16xbf16>
    %235 = arith.truncf %231 : vector<8x32xf32> to vector<8x32xbf16>
    %236 = tpu.concatenate %234, %235 in 1 : vector<8x16xbf16>, vector<8x32xbf16> -> vector<8x48xbf16>
    %cst_52 = arith.constant dense<0.000000e+00> : vector<8x128xf32>
    %237 = tpu.matmul %236, %0, %cst_52 {dimension_numbers = #tpu.dot_dimension_numbers<[1], [0], [0], [1], [0, 0, 1, 1], [], []>} : vector<8x48xbf16>, vector<48x128xbf16>, vector<8x128xf32> -> vector<8x128xf32>
    %238 = arith.addf %237, %3 : vector<8x128xf32>
    %239 = vector.extract_strided_slice %238 {offsets = [0, 0], sizes = [8, 32], strides = [1, 1]} : vector<8x128xf32> to vector<8x32xf32>
    %240 = arith.negf %239 : vector<8x32xf32>
    %241 = math.exp %240 : vector<8x32xf32>
    %cst_53 = arith.constant 1.000000e+00 : f32
    %242 = vector.broadcast %cst_53 : f32 to vector<8x32xf32>
    %243 = arith.addf %242, %241 : vector<8x32xf32>
    %244 = arith.divf %242, %243 : vector<8x32xf32>
    %245 = vector.extract_strided_slice %238 {offsets = [0, 32], sizes = [8, 32], strides = [1, 1]} : vector<8x128xf32> to vector<8x32xf32>
    %246 = arith.negf %245 : vector<8x32xf32>
    %247 = math.exp %246 : vector<8x32xf32>
    %cst_54 = arith.constant 1.000000e+00 : f32
    %248 = vector.broadcast %cst_54 : f32 to vector<8x32xf32>
    %249 = arith.addf %248, %247 : vector<8x32xf32>
    %250 = arith.divf %248, %249 : vector<8x32xf32>
    %251 = vector.extract_strided_slice %238 {offsets = [0, 64], sizes = [8, 32], strides = [1, 1]} : vector<8x128xf32> to vector<8x32xf32>
    %252 = math.tanh %251 : vector<8x32xf32>
    %253 = vector.extract_strided_slice %238 {offsets = [0, 96], sizes = [8, 32], strides = [1, 1]} : vector<8x128xf32> to vector<8x32xf32>
    %254 = arith.negf %253 : vector<8x32xf32>
    %255 = math.exp %254 : vector<8x32xf32>
    %cst_55 = arith.constant 1.000000e+00 : f32
    %256 = vector.broadcast %cst_55 : f32 to vector<8x32xf32>
    %257 = arith.addf %256, %255 : vector<8x32xf32>
    %258 = arith.divf %256, %257 : vector<8x32xf32>
    %259 = arith.mulf %250, %229 : vector<8x32xf32>
    %260 = arith.mulf %244, %252 : vector<8x32xf32>
    %261 = arith.addf %259, %260 : vector<8x32xf32>
    %262 = math.tanh %261 : vector<8x32xf32>
    %263 = arith.mulf %258, %262 : vector<8x32xf32>
    %c8_i32 = arith.constant 8 : i32
    %264 = arith.truncf %263 : vector<8x32xf32> to vector<8x32xbf16>
    %cst_56 = arith.constant dense<0.000000e+00> : vector<8x128xf32>
    %265 = tpu.matmul %264, %4, %cst_56 {dimension_numbers = #tpu.dot_dimension_numbers<[1], [0], [0], [1], [0, 0, 1, 1], [], []>} : vector<8x32xbf16>, vector<32x128xbf16>, vector<8x128xf32> -> vector<8x128xf32>
    %266 = vector.broadcast %5 : vector<1x128xf32> to vector<8x128xf32>
    %267 = arith.addf %265, %266 : vector<8x128xf32>
    %cst_57 = arith.constant dense<0xFF800000> : vector<8xf32>
    %268 = vector.multi_reduction <maximumf>, %267, %cst_57 [1] : vector<8x128xf32> to vector<8xf32>
    %269 = vector.shape_cast %268 : vector<8xf32> to vector<8x1xf32>
    %270 = vector.broadcast %269 : vector<8x1xf32> to vector<8x128xf32>
    %271 = arith.subf %267, %270 : vector<8x128xf32>
    %272 = math.exp %271 : vector<8x128xf32>
    %cst_58 = arith.constant dense<0.000000e+00> : vector<8xf32>
    %273 = vector.multi_reduction <add>, %272, %cst_58 [1] : vector<8x128xf32> to vector<8xf32>
    %274 = vector.shape_cast %273 : vector<8xf32> to vector<8x1xf32>
    %275 = math.log %274 : vector<8x1xf32>
    %276 = vector.broadcast %275 : vector<8x1xf32> to vector<8x128xf32>
    %277 = arith.subf %271, %276 : vector<8x128xf32>
    %c0_59 = arith.constant 0 : index
    %c0_60 = arith.constant 0 : index
    %278 = vector.load %arg6[%c0_59, %c0_60] : memref<8x128xf32, #tpu.memory_space<vmem>>, vector<8x128xf32>
    tpu.vector_store %arg6[%c0_59, %c0_60], %277 {strides = array<i32>} : memref<8x128xf32, #tpu.memory_space<vmem>>, vector<8x128xf32>,
    return
  }
  func.func @transform_0(%arg0: i32) -> (i32, i32, i32) {
    %c0_i32 = arith.constant 0 : i32
    %c0_i32_0 = arith.constant 0 : i32
    %c0_i32_1 = arith.constant 0 : i32
    %c0_i32_2 = arith.constant 0 : i32
    return %c0_i32, %c0_i32_0, %c0_i32_1 : i32, i32, i32
  }
  func.func @transform_1(%arg0: i32) -> (i32, i32) {
    %c0_i32 = arith.constant 0 : i32
    %c0_i32_0 = arith.constant 0 : i32
    %c0_i32_1 = arith.constant 0 : i32
    return %c0_i32, %c0_i32_0 : i32, i32
  }
  func.func @transform_2(%arg0: i32) -> (i32, i32) {
    %c0_i32 = arith.constant 0 : i32
    %c0_i32_0 = arith.constant 0 : i32
    %c0_i32_1 = arith.constant 0 : i32
    return %c0_i32, %c0_i32_0 : i32, i32
  }
  func.func @transform_3(%arg0: i32) -> (i32, i32) {
    %c0_i32 = arith.constant 0 : i32
    %c0_i32_0 = arith.constant 0 : i32
    %c0_i32_1 = arith.constant 0 : i32
    return %c0_i32, %c0_i32_0 : i32, i32
  }
  func.func @transform_4(%arg0: i32) -> (i32, i32) {
    %c0_i32 = arith.constant 0 : i32
    %c0_i32_0 = arith.constant 0 : i32
    %c0_i32_1 = arith.constant 0 : i32
    return %c0_i32, %c0_i32_0 : i32, i32
  }
  func.func @transform_5(%arg0: i32) -> (i32, i32) {
    %c0_i32 = arith.constant 0 : i32
    %c0_i32_0 = arith.constant 0 : i32
    %c0_i32_1 = arith.constant 0 : i32
    return %c0_i32, %c0_i32_0 : i32, i32
  }
}

</mosaic_0001>

<bundles_post_ra>
// kernel: tpu_custom_call.1
= control target key start
LH: loop header
LB: loop body
LE: loop exit
PB: predicated region body
PF: predicated region fallthrough
CT: control target
= control target key end

     0   :  { %10 = vsyncpa [#allocation3], 0  ;;  %s1355_s0 = inlined_call_operand.hbm [shape: bf16[8,8,16], index: 0, kind: input, shape index: {}]   ;;  %s1356_s1 = inlined_call_operand.hbm [shape: bf16[48,128], index: 1, kind: input, shape index: {}]   ;;  %s1357_s2 = inlined_call_operand.vmem [shape: f32[1,128], index: 2, kind: input, shape index: {}]   ;;  %s1358_s3 = inlined_call_operand.hbm [shape: bf16[32,128], index: 3, kind: input, shape index: {}]   ;;  %s1359_s4 = inlined_call_operand.vmem [shape: f32[1,128], index: 4, kind: input, shape index: {}]   ;;  %s1360_s5 = inlined_call_operand.hbm [shape: f32[8,128], index: 5, kind: output, shape index: {}]  }
   0x1   :  { %11 = vsyncpa [#allocation6], 0 }
   0x2   :  { %12 = vsyncpa [#allocation4], 0  ;;  %s1113_s18 = smov [#allocation5]   ;;  %s1114_s20 = smov [#allocation2]  }
   0x3   :  { %s30_s19 = sshll.u32 %s1113_s18, 4  ;;  %s18_s21 = sshll.u32 %s1114_s20, 4  ;;  %s31_s19 = int_to_ptr.vmem [resolvable:$true] %s30_s19  ;;  %s1153_s21 = int_to_ptr.vmem [resolvable:$true] %s18_s21 }
   0x4   :  { %s1019_s24 = scalar_lea.hbm %s1356_s1, 384 }
   0x5   :  { %p1020_p0 = scmp.ne.s32.totalorder %s1356_s1, %s1019_s24  ;;  %p1023_p1 = scmp.lt.u32.totalorder %s1019_s24, %s1356_s1 }
   0x7   :  { %p1025_p2 = pnand %p1023_p1, %p1020_p0 }
   0x9   :  { %1028 = shalt.err (!%p1025_p2)
}
   0xa   :  { %s1029_s29 = scalar_lea.vmem %s31_s19, 384  ;;  %p1034_p4 = scmp.lt.s32.totalorder %s31_s19, %s31_s19 }
   0xb   :  { %p1030_p3 = scmp.ne.s32.totalorder %s31_s19, %s1029_s29  ;;  %p1035_p5 = scmp.lt.s32.totalorder %s1029_s29, %s1029_s29 }
   0xd   :  { %p1036_p6 = por %p1035_p5, %p1034_p4 }
   0xf   :  { %p1037_p7 = pnand %p1036_p6, %p1030_p3 }
  0x11   :  { %1040 = shalt.err (!%p1037_p7)
}
  0x12   :  { %s1115_s30 = smov 64   ;;  %s1116_s6 = smov 4  }
  0x13   :  { %36 = dma.hbm_to_vmem [thread:$0]  %s1356_s1, 384, %s31_s19, [#allocation6], %s1115_s30, %s1115_s30, %s1116_s6  }
  0x14   :  { %s1041_s11 = scalar_lea.hbm %s1355_s0, 512 }
  0x15   :  { %p1042_p8 = scmp.ne.s32.totalorder %s1355_s0, %s1041_s11  ;;  %p1045_p9 = scmp.lt.u32.totalorder %s1041_s11, %s1355_s0 }
  0x17   :  { %p1047_p10 = pnand %p1045_p9, %p1042_p8 }
  0x19   :  { %1050 = shalt.err (!%p1047_p10)
}
  0x1a   :  { %s1051_s16 = scalar_lea.vmem %s1153_s21, 512  ;;  %p1056_p12 = scmp.lt.s32.totalorder %s1153_s21, %s1153_s21 }
  0x1b   :  { %p1052_p11 = scmp.ne.s32.totalorder %s1153_s21, %s1051_s16  ;;  %p1057_p13 = scmp.lt.s32.totalorder %s1051_s16, %s1051_s16 }
  0x1d   :  { %p1058_p0 = por %p1057_p13, %p1056_p12 }
  0x1f   :  { %p1059_p1 = pnand %p1058_p0, %p1052_p11 }
  0x21   :  { %1062 = shalt.err (!%p1059_p1)
}
  0x22   :  { %24 = dma.hbm_to_vmem [thread:$0]  %s1355_s0, 512, %s1153_s21, [#allocation3], %s1115_s30, %s1115_s30, %s1116_s6  }
  0x23   :  { %s1117_s18 = smov [#allocation7]   ;;  %s1063_s23 = scalar_lea.hbm %s1358_s3, 256 }
  0x24   :  { %s44_s19 = sshll.u32 %s1117_s18, 4  ;;  %p1064_p2 = scmp.ne.s32.totalorder %s1358_s3, %s1063_s23  ;;  %s45_s19 = int_to_ptr.vmem [resolvable:$true] %s44_s19 }
  0x25   :  { %p1067_p3 = scmp.lt.u32.totalorder %s1063_s23, %s1358_s3 }
  0x27   :  { %p1069_p4 = pnand %p1067_p3, %p1064_p2 }
  0x29   :  { %1072 = shalt.err (!%p1069_p4)
}
  0x2a   :  { %s1073_s28 = scalar_lea.vmem %s45_s19, 256  ;;  %p1078_p6 = scmp.lt.s32.totalorder %s45_s19, %s45_s19 }
  0x2b   :  { %p1074_p5 = scmp.ne.s32.totalorder %s45_s19, %s1073_s28  ;;  %p1079_p7 = scmp.lt.s32.totalorder %s1073_s28, %s1073_s28 }
  0x2d   :  { %p1080_p8 = por %p1079_p7, %p1078_p6 }
  0x2f   :  { %p1081_p9 = pnand %p1080_p8, %p1074_p5 }
  0x31   :  { %1084 = shalt.err (!%p1081_p9)
}
  0x32   :  { %50 = dma.hbm_to_vmem [thread:$0]  %s1358_s3, 256, %s45_s19, [#allocation6], %s1115_s30, %s1115_s30, %s1116_s6  }
  0x33   :  { %1107 = dma.done.wait [#allocation3], 512  }
  0x34   :  { %1108 = vsyncadd [#allocation3], 4294966784 }
  0x35   :  { %1109 = dma.done.wait [#allocation6], 640  }
  0x36   :  { %1110 = vsyncadd [#allocation6], 4294966656  ;;  %v1118_v0 = vmov 0.0   ;;  %vm1119_vm0 = vmmov 0   ;;  %v1211_v1 = vld [vmem:[#allocation5] sm:$0xff]   ;;  %v1214_v2 = vld [vmem:[#allocation5 + $0x8] sm:$0xff]  }
  0x37   :  { %848 = vmatprep.subr.bf16.mxu0 %v1118_v0  ;;  %854 = vmatprep.mubr.msk.bf16.mxu0 %vm1119_vm0, %v1118_v0  ;;  %v1220_v3 = vld [vmem:[#allocation5 + $0x10] sm:$0xff]   ;;  %v81_v4 = vld [vmem:[#allocation2] sm:$0xf]  ;;  %vm82_vm1 = vcmask 130048   ;;  %vm104_vm2 = vcmask 392192   ;;  %s1121_s6 = smov 48  }
  0x38   :  { %858 = vmatprep.subr.bf16.mxu1 %v1118_v0  ;;  %864 = vmatprep.mubr.msk.bf16.mxu1 %vm1119_vm0, %v1118_v0  ;;  %v85_v5 = vsel %vm82_vm1, %v81_v4, 0  ;;  %v1242_v6 = vld [vmem:[%s1357_s2] ss:$0 sm:$0xff]  ;;  %s1120_s2 = smov 32   ;;  %v172_v26 = vld [vmem:[#allocation2 + $0x4] sm:$0xf] }
  0x39   :  { %849 = vmatpush3.bf16.msra.mxu0 %v1211_v1  ;;  %859 = vmatpush3.bf16.msra.mxu1 %v1211_v1  ;;  %v247_v48 = vld [vmem:[#allocation2 + $0x8] sm:$0xf]  ;;  %vm718_vm3 = vcmask 261120  }
  0x3a   :  { %850 = vmatprep.subr.bf16.mxu0 %v1118_v0  ;;  %860 = vmatprep.subr.bf16.mxu1 %v1118_v0 }
  0x3d   :  { %851 = vmatpush3.bf16.msra.mxu0 %v1214_v2  ;;  %861 = vmatpush3.bf16.msra.mxu1 %v1214_v2 }
  0x3e   :  { %852 = vmatprep.subr.bf16.mxu0 %v1118_v0  ;;  %862 = vmatprep.subr.bf16.mxu1 %v1118_v0 }
  0x41   :  { %853 = vmatpush3.bf16.msra.mxu0 %v1220_v3  ;;  %863 = vmatpush3.bf16.msra.mxu1 %v1220_v3 }
  0x42   :  { %868 = vmatprep.subr.bf16.mxu0 %v1118_v0  ;;  %878 = vmatprep.subr.bf16.mxu1 %v1118_v0 }
  0x44   :  { %855 = vmatmul.mubr.msk.bf16.vlgmr.msra.gmra.mrb[0].mxu0 %vm104_vm2, %v85_v5 }
  0x45   :  { %869 = vmatpush3.bf16.msra.mxu0 %v1211_v1  ;;  %874 = vmatprep.mubr.msk.bf16.mxu0 %vm1119_vm0, %v1118_v0 }
  0x46   :  { %870 = vmatprep.subr.bf16.mxu0 %v1118_v0 }
  0x49   :  { %871 = vmatpush3.bf16.msra.mxu0 %v1214_v2 }
  0x4a   :  { %872 = vmatprep.subr.bf16.mxu0 %v1118_v0 }
  0x4d   :  { %873 = vmatpush3.bf16.msra.mxu0 %v1220_v3 }
  0x4e   :  { %888 = vmatprep.subr.bf16.mxu0 %v1118_v0 }
 0x117   :  { %v141_v7 = vpop.f32.mrb[0].mxu0 }
 0x118   :  { %v142_v8 = vadd.f32 %v1242_v6, %v141_v7  ;;  %v856_v9 = vpop.f32.mrb[1].mxu0 }
 0x119   :  { %v144_v10 = vpop.f32.mrb[2].mxu0 }
 0x11a   :  { %v857_v11 = vpop.f32.mrb[3].mxu0  ;;  %951 = vtanh.f32 %v142_v8  ;;  %v794_v13 = vmul.f32 -1.442695, %v142_v8 }
 0x11b   :  { %v322_v11 = vld [vmem:[#allocation2 + $0xc] sm:$0xf] }
 0x11c   :  { %953 = vpow2.f32 %v794_v13 }
 0x124   :  { %v952_v12 = vpop.eup %951 }
 0x125   :  { %156 = vrot.lane.b32.xlu0 %v952_v12, %s1115_s30 }
 0x126   :  { %v954_v14 = vpop.eup %953 }
 0x127   :  { %v150_v15 = vadd.f32 1.0, %v954_v14 }
 0x129   :  { %955 = vrcp.f32 %v150_v15 }
 0x133   :  { %v956_v16 = vpop.eup %955 }
 0x134   :  { %v154_v19 = vmul.f32 0.0, %v956_v16 }
 0x197   :  { %v157_v17 = vpop.permute.xlu0 %156 }
 0x198   :  { %v159_v18 = vmul.f32 %v956_v16, %v157_v17 }
 0x19a   :  { %161 = vrot.lane.b32.xlu0 %v159_v18, %s1120_s2 }
 0x20c   :  { %v162_v20 = vpop.permute.xlu0 %161 }
 0x20d   :  { %v164_v21 = vadd.f32 %v162_v20, %v154_v19 }
 0x20f   :  { %957 = vtanh.f32 %v164_v21 }
 0x219   :  { %v958_v22 = vpop.eup %957 }
 0x21a   :  { %167 = vrot.lane.b32.xlu1 %v958_v22, %s1115_s30 }
 0x28c   :  { %v168_v23 = vpop.permute.xlu1 %167 }
 0x28d   :  { %v170_v24 = vmul.f32 %v956_v16, %v168_v23 }
 0x28f   :  { %v173_v25 = vpack.c.bf16 %v170_v24, %v170_v24 }
 0x291   :  { %175 = vrot.lane.b32.xlu1 %v173_v25, %s1121_s6 }
 0x303   :  { %v176_v27 = vpop.permute.xlu1 %175 }
 0x304   :  { %v179_v28 = vsel %vm82_vm1, %v172_v26, %v176_v27 }
 0x305   :  { %865 = vmatmul.mubr.msk.bf16.vlgmr.msra.gmra.mrb[0].mxu1 %vm104_vm2, %v179_v28 }
 0x306   :  { %879 = vmatpush3.bf16.msra.mxu1 %v1211_v1  ;;  %884 = vmatprep.mubr.msk.bf16.mxu1 %vm1119_vm0, %v1118_v0 }
 0x307   :  { %880 = vmatprep.subr.bf16.mxu1 %v1118_v0 }
 0x30a   :  { %881 = vmatpush3.bf16.msra.mxu1 %v1214_v2 }
 0x30b   :  { %882 = vmatprep.subr.bf16.mxu1 %v1118_v0 }
 0x30e   :  { %883 = vmatpush3.bf16.msra.mxu1 %v1220_v3 }
 0x30f   :  { %898 = vmatprep.subr.bf16.mxu1 %v1118_v0 }
 0x3d8   :  { %v216_v29 = vpop.f32.mrb[0].mxu1 }
 0x3d9   :  { %v217_v30 = vadd.f32 %v1242_v6, %v216_v29  ;;  %v866_v31 = vpop.f32.mrb[1].mxu1 }
 0x3da   :  { %v219_v32 = vpop.f32.mrb[2].mxu1 }
 0x3db   :  { %959 = vtanh.f32 %v217_v30  ;;  %v867_v33 = vpop.f32.mrb[3].mxu1  ;;  %v796_v35 = vmul.f32 -1.442695, %v217_v30 }
 0x3dc   :  { %v397_v33 = vld [vmem:[#allocation2 + $0x10] sm:$0xf] }
 0x3dd   :  { %961 = vpow2.f32 %v796_v35 }
 0x3e5   :  { %v960_v34 = vpop.eup %959 }
 0x3e6   :  { %231 = vrot.lane.b32.xlu0 %v960_v34, %s1115_s30 }
 0x3e7   :  { %v962_v36 = vpop.eup %961 }
 0x3e8   :  { %v225_v37 = vadd.f32 1.0, %v962_v36 }
 0x3ea   :  { %963 = vrcp.f32 %v225_v37 }
 0x3f4   :  { %v964_v38 = vpop.eup %963 }
 0x3f5   :  { %v229_v41 = vmul.f32 %v964_v38, %v164_v21 }
 0x458   :  { %v232_v39 = vpop.permute.xlu0 %231 }
 0x459   :  { %v234_v40 = vmul.f32 %v964_v38, %v232_v39 }
 0x45b   :  { %236 = vrot.lane.b32.xlu1 %v234_v40, %s1120_s2 }
 0x4cd   :  { %v237_v42 = vpop.permute.xlu1 %236 }
 0x4ce   :  { %v239_v43 = vadd.f32 %v237_v42, %v229_v41 }
 0x4d0   :  { %965 = vtanh.f32 %v239_v43 }
 0x4da   :  { %v966_v44 = vpop.eup %965 }
 0x4db   :  { %242 = vrot.lane.b32.xlu0 %v966_v44, %s1115_s30 }
 0x54d   :  { %v243_v45 = vpop.permute.xlu0 %242 }
 0x54e   :  { %v245_v46 = vmul.f32 %v964_v38, %v243_v45 }
 0x550   :  { %v248_v47 = vpack.c.bf16 %v245_v46, %v245_v46 }
 0x552   :  { %250 = vrot.lane.b32.xlu1 %v248_v47, %s1121_s6 }
 0x5c4   :  { %v251_v49 = vpop.permute.xlu1 %250 }
 0x5c5   :  { %v254_v50 = vsel %vm82_vm1, %v247_v48, %v251_v49 }
 0x5c6   :  { %875 = vmatmul.mubr.msk.bf16.vlgmr.msra.gmra.mrb[4].mxu0 %vm104_vm2, %v254_v50 }
 0x5c7   :  { %889 = vmatpush3.bf16.msra.mxu0 %v1211_v1  ;;  %894 = vmatprep.mubr.msk.bf16.mxu0 %vm1119_vm0, %v1118_v0 }
 0x5c8   :  { %890 = vmatprep.subr.bf16.mxu0 %v1118_v0 }
 0x5cb   :  { %891 = vmatpush3.bf16.msra.mxu0 %v1214_v2 }
 0x5cc   :  { %892 = vmatprep.subr.bf16.mxu0 %v1118_v0 }
 0x5cf   :  { %893 = vmatpush3.bf16.msra.mxu0 %v1220_v3 }
 0x5d0   :  { %908 = vmatprep.subr.bf16.mxu0 %v1118_v0 }
 0x699   :  { %v291_v51 = vpop.f32.mrb[4].mxu0 }
 0x69a   :  { %v292_v52 = vadd.f32 %v1242_v6, %v291_v51  ;;  %v876_v53 = vpop.f32.mrb[5].mxu0 }
 0x69b   :  { %v294_v54 = vpop.f32.mrb[6].mxu0 }
 0x69c   :  { %967 = vtanh.f32 %v292_v52  ;;  %v877_v55 = vpop.f32.mrb[7].mxu0  ;;  %v798_v57 = vmul.f32 -1.442695, %v292_v52 }
 0x69d   :  { %v472_v55 = vld [vmem:[#allocation2 + $0x14] sm:$0xf] }
 0x69e   :  { %969 = vpow2.f32 %v798_v57 }
 0x6a6   :  { %v968_v56 = vpop.eup %967 }
 0x6a7   :  { %306 = vrot.lane.b32.xlu0 %v968_v56, %s1115_s30 }
 0x6a8   :  { %v970_v58 = vpop.eup %969 }
 0x6a9   :  { %v300_v59 = vadd.f32 1.0, %v970_v58 }
 0x6ab   :  { %971 = vrcp.f32 %v300_v59 }
 0x6b5   :  { %v972_v60 = vpop.eup %971 }
 0x6b6   :  { %v304_v63 = vmul.f32 %v972_v60, %v239_v43 }
 0x719   :  { %v307_v61 = vpop.permute.xlu0 %306 }
 0x71a   :  { %v309_v62 = vmul.f32 %v972_v60, %v307_v61 }
 0x71c   :  { %311 = vrot.lane.b32.xlu1 %v309_v62, %s1120_s2 }
 0x78e   :  { %v312_v4 = vpop.permute.xlu1 %311 }
 0x78f   :  { %v314_v5 = vadd.f32 %v312_v4, %v304_v63 }
 0x791   :  { %973 = vtanh.f32 %v314_v5 }
 0x79b   :  { %v974_v7 = vpop.eup %973 }
 0x79c   :  { %317 = vrot.lane.b32.xlu0 %v974_v7, %s1115_s30 }
 0x80e   :  { %v318_v8 = vpop.permute.xlu0 %317 }
 0x80f   :  { %v320_v9 = vmul.f32 %v972_v60, %v318_v8 }
 0x811   :  { %v323_v10 = vpack.c.bf16 %v320_v9, %v320_v9 }
 0x813   :  { %325 = vrot.lane.b32.xlu1 %v323_v10, %s1121_s6 }
 0x885   :  { %v326_v12 = vpop.permute.xlu1 %325 }
 0x886   :  { %v329_v13 = vsel %vm82_vm1, %v322_v11, %v326_v12 }
 0x887   :  { %885 = vmatmul.mubr.msk.bf16.vlgmr.msra.gmra.mrb[4].mxu1 %vm104_vm2, %v329_v13 }
 0x888   :  { %899 = vmatpush3.bf16.msra.mxu1 %v1211_v1  ;;  %904 = vmatprep.mubr.msk.bf16.mxu1 %vm1119_vm0, %v1118_v0 }
 0x889   :  { %900 = vmatprep.subr.bf16.mxu1 %v1118_v0 }
 0x88c   :  { %901 = vmatpush3.bf16.msra.mxu1 %v1214_v2 }
 0x88d   :  { %902 = vmatprep.subr.bf16.mxu1 %v1118_v0 }
 0x890   :  { %903 = vmatpush3.bf16.msra.mxu1 %v1220_v3 }
 0x891   :  { %918 = vmatprep.subr.bf16.mxu1 %v1118_v0 }
 0x95a   :  { %v366_v14 = vpop.f32.mrb[4].mxu1 }
 0x95b   :  { %v367_v15 = vadd.f32 %v1242_v6, %v366_v14  ;;  %v886_v16 = vpop.f32.mrb[5].mxu1 }
 0x95c   :  { %v369_v17 = vpop.f32.mrb[6].mxu1 }
 0x95d   :  { %975 = vtanh.f32 %v367_v15  ;;  %v887_v18 = vpop.f32.mrb[7].mxu1  ;;  %v800_v20 = vmul.f32 -1.442695, %v367_v15  ;;  %v547_v15 = vld [vmem:[#allocation2 + $0x18] sm:$0xf] }
 0x95f   :  { %977 = vpow2.f32 %v800_v20 }
 0x967   :  { %v976_v19 = vpop.eup %975 }
 0x968   :  { %381 = vrot.lane.b32.xlu0 %v976_v19, %s1115_s30 }
 0x969   :  { %v978_v21 = vpop.eup %977 }
 0x96a   :  { %v375_v22 = vadd.f32 1.0, %v978_v21 }
 0x96c   :  { %979 = vrcp.f32 %v375_v22 }
 0x976   :  { %v980_v23 = vpop.eup %979 }
 0x977   :  { %v379_v26 = vmul.f32 %v980_v23, %v314_v5 }
 0x9da   :  { %v382_v24 = vpop.permute.xlu0 %381 }
 0x9db   :  { %v384_v25 = vmul.f32 %v980_v23, %v382_v24 }
 0x9dd   :  { %386 = vrot.lane.b32.xlu1 %v384_v25, %s1120_s2 }
 0xa4f   :  { %v387_v27 = vpop.permute.xlu1 %386 }
 0xa50   :  { %v389_v28 = vadd.f32 %v387_v27, %v379_v26 }
 0xa52   :  { %981 = vtanh.f32 %v389_v28 }
 0xa5c   :  { %v982_v29 = vpop.eup %981 }
 0xa5d   :  { %392 = vrot.lane.b32.xlu0 %v982_v29, %s1115_s30 }
 0xacf   :  { %v393_v30 = vpop.permute.xlu0 %392 }
 0xad0   :  { %v395_v31 = vmul.f32 %v980_v23, %v393_v30 }
 0xad2   :  { %v398_v32 = vpack.c.bf16 %v395_v31, %v395_v31 }
 0xad4   :  { %400 = vrot.lane.b32.xlu1 %v398_v32, %s1121_s6 }
 0xb46   :  { %v401_v34 = vpop.permute.xlu1 %400 }
 0xb47   :  { %v404_v35 = vsel %vm82_vm1, %v397_v33, %v401_v34 }
 0xb48   :  { %895 = vmatmul.mubr.msk.bf16.vlgmr.msra.gmra.mrb[8].mxu0 %vm104_vm2, %v404_v35 }
 0xb49   :  { %909 = vmatpush3.bf16.msra.mxu0 %v1211_v1  ;;  %914 = vmatprep.mubr.msk.bf16.mxu0 %vm1119_vm0, %v1118_v0 }
 0xb4a   :  { %910 = vmatprep.subr.bf16.mxu0 %v1118_v0 }
 0xb4d   :  { %911 = vmatpush3.bf16.msra.mxu0 %v1214_v2 }
 0xb4e   :  { %912 = vmatprep.subr.bf16.mxu0 %v1118_v0 }
 0xb51   :  { %913 = vmatpush3.bf16.msra.mxu0 %v1220_v3 }
 0xb52   :  { %928 = vmatprep.subr.bf16.mxu0 %v1118_v0 }
 0xc1b   :  { %v441_v36 = vpop.f32.mrb[8].mxu0 }
 0xc1c   :  { %v442_v37 = vadd.f32 %v1242_v6, %v441_v36  ;;  %v896_v38 = vpop.f32.mrb[9].mxu0 }
 0xc1d   :  { %v444_v39 = vpop.f32.mrb[10].mxu0 }
 0xc1e   :  { %983 = vtanh.f32 %v442_v37  ;;  %v897_v40 = vpop.f32.mrb[11].mxu0  ;;  %v802_v42 = vmul.f32 -1.442695, %v442_v37  ;;  %v622_v37 = vld [vmem:[#allocation2 + $0x1c] sm:$0xf] }
 0xc20   :  { %985 = vpow2.f32 %v802_v42 }
 0xc28   :  { %v984_v41 = vpop.eup %983 }
 0xc29   :  { %456 = vrot.lane.b32.xlu0 %v984_v41, %s1115_s30 }
 0xc2a   :  { %v986_v43 = vpop.eup %985 }
 0xc2b   :  { %v450_v44 = vadd.f32 1.0, %v986_v43 }
 0xc2d   :  { %987 = vrcp.f32 %v450_v44 }
 0xc37   :  { %v988_v45 = vpop.eup %987 }
 0xc38   :  { %v454_v48 = vmul.f32 %v988_v45, %v389_v28 }
 0xc9b   :  { %v457_v46 = vpop.permute.xlu0 %456 }
 0xc9c   :  { %v459_v47 = vmul.f32 %v988_v45, %v457_v46 }
 0xc9e   :  { %461 = vrot.lane.b32.xlu1 %v459_v47, %s1120_s2 }
 0xd10   :  { %v462_v49 = vpop.permute.xlu1 %461 }
 0xd11   :  { %v464_v50 = vadd.f32 %v462_v49, %v454_v48 }
 0xd13   :  { %989 = vtanh.f32 %v464_v50 }
 0xd1d   :  { %v990_v51 = vpop.eup %989 }
 0xd1e   :  { %467 = vrot.lane.b32.xlu0 %v990_v51, %s1115_s30 }
 0xd90   :  { %v468_v52 = vpop.permute.xlu0 %467 }
 0xd91   :  { %v470_v53 = vmul.f32 %v988_v45, %v468_v52 }
 0xd93   :  { %v473_v54 = vpack.c.bf16 %v470_v53, %v470_v53 }
 0xd95   :  { %475 = vrot.lane.b32.xlu1 %v473_v54, %s1121_s6  ;;  %v949_v54 = vld [vmem:[#allocation7] sm:$0xff]  }
 0xe07   :  { %v476_v56 = vpop.permute.xlu1 %475 }
 0xe08   :  { %v479_v57 = vsel %vm82_vm1, %v472_v55, %v476_v56  ;;  %v950_v55 = vld [vmem:[#allocation7 + $0x8] sm:$0xff]  }
 0xe09   :  { %905 = vmatmul.mubr.msk.bf16.vlgmr.msra.gmra.mrb[8].mxu1 %vm104_vm2, %v479_v57 }
 0xe0a   :  { %919 = vmatpush3.bf16.msra.mxu1 %v1211_v1  ;;  %924 = vmatprep.mubr.msk.bf16.mxu1 %vm1119_vm0, %v1118_v0 }
 0xe0b   :  { %920 = vmatprep.subr.bf16.mxu1 %v1118_v0 }
 0xe0e   :  { %921 = vmatpush3.bf16.msra.mxu1 %v1214_v2 }
 0xe0f   :  { %922 = vmatprep.subr.bf16.mxu1 %v1118_v0 }
 0xe12   :  { %923 = vmatpush3.bf16.msra.mxu1 %v1220_v3 }
 0xedc   :  { %v516_v58 = vpop.f32.mrb[8].mxu1 }
 0xedd   :  { %v517_v59 = vadd.f32 %v1242_v6, %v516_v58  ;;  %v906_v60 = vpop.f32.mrb[9].mxu1 }
 0xede   :  { %v519_v61 = vpop.f32.mrb[10].mxu1 }
 0xedf   :  { %991 = vtanh.f32 %v517_v59  ;;  %v907_v62 = vpop.f32.mrb[11].mxu1  ;;  %v804_v1 = vmul.f32 -1.442695, %v517_v59  ;;  %v809_v61 = vld [vmem:[%s1359_s4] ss:$0 sm:$0xff] }
 0xee1   :  { %993 = vpow2.f32 %v804_v1 }
 0xee9   :  { %v992_v63 = vpop.eup %991 }
 0xeea   :  { %531 = vrot.lane.b32.xlu0 %v992_v63, %s1115_s30 }
 0xeeb   :  { %v994_v4 = vpop.eup %993 }
 0xeec   :  { %v525_v5 = vadd.f32 1.0, %v994_v4 }
 0xeee   :  { %995 = vrcp.f32 %v525_v5 }
 0xef8   :  { %v996_v2 = vpop.eup %995 }
 0xef9   :  { %v529_v3 = vmul.f32 %v996_v2, %v464_v50 }
 0xf5c   :  { %v532_v7 = vpop.permute.xlu0 %531 }
 0xf5d   :  { %v534_v8 = vmul.f32 %v996_v2, %v532_v7 }
 0xf5f   :  { %536 = vrot.lane.b32.xlu1 %v534_v8, %s1120_s2 }
 0xfd1   :  { %v537_v9 = vpop.permute.xlu1 %536 }
 0xfd2   :  { %v539_v10 = vadd.f32 %v537_v9, %v529_v3 }
 0xfd4   :  { %997 = vtanh.f32 %v539_v10 }
 0xfde   :  { %v998_v11 = vpop.eup %997 }
 0xfdf   :  { %542 = vrot.lane.b32.xlu0 %v998_v11, %s1115_s30 }
0x1051   :  { %v543_v12 = vpop.permute.xlu0 %542 }
0x1052   :  { %v545_v13 = vmul.f32 %v996_v2, %v543_v12 }
0x1054   :  { %v548_v14 = vpack.c.bf16 %v545_v13, %v545_v13 }
0x1056   :  { %550 = vrot.lane.b32.xlu1 %v548_v14, %s1121_s6 }
0x10c8   :  { %v551_v16 = vpop.permute.xlu1 %550 }
0x10c9   :  { %v554_v17 = vsel %vm82_vm1, %v547_v15, %v551_v16 }
0x10ca   :  { %915 = vmatmul.mubr.msk.bf16.vlgmr.msra.gmra.mrb[12].mxu0 %vm104_vm2, %v554_v17 }
0x10cb   :  { %932 = vmatprep.mubr.msk.bf16.mxu0 %vm1119_vm0, %v1118_v0  ;;  %929 = vmatpush3.bf16.msra.mxu0 %v949_v54 }
0x10cc   :  { %930 = vmatprep.subr.bf16.mxu0 %v1118_v0 }
0x10cf   :  { %931 = vmatpush3.bf16.msra.mxu0 %v950_v55 }
0x119d   :  { %v591_v18 = vpop.f32.mrb[12].mxu0 }
0x119e   :  { %v592_v19 = vadd.f32 %v1242_v6, %v591_v18  ;;  %v916_v20 = vpop.f32.mrb[13].mxu0 }
0x119f   :  { %v594_v21 = vpop.f32.mrb[14].mxu0 }
0x11a0   :  { %999 = vtanh.f32 %v592_v19  ;;  %v917_v22 = vpop.f32.mrb[15].mxu0  ;;  %v806_v24 = vmul.f32 -1.442695, %v592_v19 }
0x11a2   :  { %1001 = vpow2.f32 %v806_v24 }
0x11aa   :  { %v1000_v23 = vpop.eup %999 }
0x11ab   :  { %606 = vrot.lane.b32.xlu0 %v1000_v23, %s1115_s30 }
0x11ac   :  { %v1002_v25 = vpop.eup %1001 }
0x11ad   :  { %v600_v26 = vadd.f32 1.0, %v1002_v25 }
0x11af   :  { %1003 = vrcp.f32 %v600_v26 }
0x11b9   :  { %v1004_v27 = vpop.eup %1003 }
0x11ba   :  { %v604_v30 = vmul.f32 %v1004_v27, %v539_v10 }
0x121d   :  { %v607_v28 = vpop.permute.xlu0 %606 }
0x121e   :  { %v609_v29 = vmul.f32 %v1004_v27, %v607_v28 }
0x1220   :  { %611 = vrot.lane.b32.xlu1 %v609_v29, %s1120_s2 }
0x1292   :  { %v612_v31 = vpop.permute.xlu1 %611 }
0x1293   :  { %v614_v32 = vadd.f32 %v612_v31, %v604_v30 }
0x1295   :  { %1005 = vtanh.f32 %v614_v32 }
0x129f   :  { %v1006_v33 = vpop.eup %1005 }
0x12a0   :  { %617 = vrot.lane.b32.xlu0 %v1006_v33, %s1115_s30 }
0x1312   :  { %v618_v34 = vpop.permute.xlu0 %617 }
0x1313   :  { %v620_v35 = vmul.f32 %v1004_v27, %v618_v34 }
0x1315   :  { %v623_v36 = vpack.c.bf16 %v620_v35, %v620_v35 }
0x1317   :  { %625 = vrot.lane.b32.xlu1 %v623_v36, %s1121_s6 }
0x1389   :  { %v626_v38 = vpop.permute.xlu1 %625 }
0x138a   :  { %v629_v39 = vsel %vm82_vm1, %v622_v37, %v626_v38 }
0x138b   :  { %925 = vmatmul.mubr.msk.bf16.vlgmr.msra.gmra.mrb[12].mxu1 %vm104_vm2, %v629_v39 }
0x145e   :  { %v666_v40 = vpop.f32.mrb[12].mxu1 }
0x145f   :  { %v667_v41 = vadd.f32 %v1242_v6, %v666_v40  ;;  %v926_v42 = vpop.f32.mrb[13].mxu1 }
0x1460   :  { %v669_v43 = vpop.f32.mrb[14].mxu1 }
0x1461   :  { %1007 = vtanh.f32 %v667_v41  ;;  %v927_v44 = vpop.f32.mrb[15].mxu1  ;;  %v808_v46 = vmul.f32 -1.442695, %v667_v41 }
0x1463   :  { %1009 = vpow2.f32 %v808_v46 }
0x146b   :  { %v1008_v45 = vpop.eup %1007 }
0x146c   :  { %681 = vrot.lane.b32.xlu0 %v1008_v45, %s1115_s30 }
0x146d   :  { %v1010_v47 = vpop.eup %1009 }
0x146e   :  { %v675_v48 = vadd.f32 1.0, %v1010_v47 }
0x1470   :  { %1011 = vrcp.f32 %v675_v48 }
0x147a   :  { %v1012_v49 = vpop.eup %1011 }
0x147b   :  { %v679_v52 = vmul.f32 %v1012_v49, %v614_v32 }
0x14de   :  { %v682_v50 = vpop.permute.xlu0 %681 }
0x14df   :  { %v684_v51 = vmul.f32 %v1012_v49, %v682_v50 }
0x14e1   :  { %686 = vrot.lane.b32.xlu1 %v684_v51, %s1120_s2 }
0x1553   :  { %v687_v53 = vpop.permute.xlu1 %686 }
0x1554   :  { %v689_v6 = vadd.f32 %v687_v53, %v679_v52 }
0x1556   :  { %1013 = vtanh.f32 %v689_v6 }
0x1560   :  { %v1014_v56 = vpop.eup %1013 }
0x1561   :  { %692 = vrot.lane.b32.xlu0 %v1014_v56, %s1115_s30  ;;  %s1122_s30 = smov [#allocation8]  }
0x1562   :  { %s779_s9 = sshll.u32 %s1122_s30, 4  ;;  %s780_s9 = int_to_ptr.vmem [resolvable:$true] %s779_s9 }
0x1563   :  { %s1085_s4 = scalar_lea.vmem %s780_s9, 128  ;;  %p1090_p11 = scmp.lt.s32.totalorder %s780_s9, %s780_s9 }
0x1564   :  { %p1086_p10 = scmp.ne.s32.totalorder %s780_s9, %s1085_s4  ;;  %p1091_p12 = scmp.lt.s32.totalorder %s1085_s4, %s1085_s4 }
0x1566   :  { %p1092_p13 = por %p1091_p12, %p1090_p11 }
0x1568   :  { %p1093_p0 = pnand %p1092_p13, %p1086_p10 }
0x15d3   :  { %v693_v57 = vpop.permute.xlu0 %692 }
0x15d4   :  { %v695_v58 = vmul.f32 %v1012_v49, %v693_v57 }
0x15d6   :  { %v696_v59 = vpack.c.bf16 %v695_v58, %v695_v58 }
0x15d8   :  { %704 = vrot.lane.b32.xlu1 %v696_v59, %s1120_s2 }
0x164a   :  { %v705_v60 = vpop.permute.xlu1 %704 }
0x164b   :  { %933 = vmatmul.mubr.msk.bf16.vlgmr.msra.gmra.mrb[16].mxu0 %vm718_vm3, %v705_v60 }
0x171e   :  { %v756_v62 = vpop.f32.mrb[16].mxu0 }
0x171f   :  { %v757_v63 = vadd.f32 %v809_v61, %v756_v62  ;;  %v934_v1 = vpop.f32.mrb[17].mxu0 }
0x1720   :  { %v759_v0 = vpop.f32.mrb[18].mxu0 }
0x1721   :  { %762 = vmax.xlane.f32.xlu0 %v757_v63  ;;  %v935_v4 = vpop.f32.mrb[19].mxu0 }
0x17ae   :  { %v763_v5 = vpop.xlane.xlu0 %762 }
0x17af   :  { %v764_v2 = vsub.f32 %v757_v63, %v763_v5 }
0x17b1   :  { %v765_v7 = vmul.f32 1.442695, %v764_v2 }
0x17b3   :  { %1015 = vpow2.f32 %v765_v7 }
0x17bd   :  { %v1016_v8 = vpop.eup %1015 }
0x17be   :  { %767 = vadd.xlane.f32.xlu1 %v1016_v8 }
0x184b   :  { %v768_v3 = vpop.xlane.xlu1 %767 }
0x184c   :  { %1017 = vlog2.f32 %v768_v3 }
0x1856   :  { %v1018_v9 = vpop.eup %1017 }
0x1857   :  { %v770_v10 = vmul.f32 0.6931472, %v1018_v9 }
0x1859   :  { %v771_v11 = vsub.f32 %v764_v2, %v770_v10 }
0x185b   :  { %772 = vst [vmem:[#allocation8] sm:$0xff] %v771_v11 }
0x185c   :  { %1096 = shalt.err (!%p1093_p0)
}
0x185d   :  { %s1097_s12 = scalar_lea.hbm %s1360_s5, 128 }
0x185e   :  { %p1098_p1 = scmp.ne.s32.totalorder %s1360_s5, %s1097_s12  ;;  %p1101_p2 = scmp.lt.u32.totalorder %s1097_s12, %s1360_s5 }
0x1860   :  { %p1103_p3 = pnand %p1101_p2, %p1098_p1 }
0x1862   :  { %1106 = shalt.err (!%p1103_p3)
}
0x1863   :  { %782 = dma.vmem_to_hbm [thread:$0]  %s780_s9, 128, %s1360_s5, [#allocation4]  }
0x1864   :  { %1111 = dma.done.wait [#allocation4], 128  }
0x1865   :  { %1112 = vsyncadd [#allocation4], 4294967168 }
0x1866   :  { %786 = vsyncpa [#allocation3], 1 }
0x1867   :  { %787 = vsyncpa [#allocation6], 1 }
0x1868   :  { %788 = vsyncpa [#allocation4], 1 }

</bundles_post_ra>
